<compile_context>
chip_gen: v5e
topology: v5e:2x2
jax: 0.10.0
libtpu: 0.0.40
codegen_flags: <defaults>
</compile_context>

<pallas_src>
import functools

import jax
import jax.numpy as jnp
from jax import lax
from jax.experimental import pallas as pl
from jax.experimental.pallas import tpu as pltpu

EPS = 1e-5  # nn.BatchNorm2d default eps


# --------------------------------------------------------------------------
# hardware-aware sizing helpers
# --------------------------------------------------------------------------
@functools.lru_cache()
def _vmem_limit_bytes():
    """~60% of physical VMEM (v5e/v6e 128 MiB, v7x 64 MiB), clamped."""
    cap = 64 << 20
    try:
        info = pltpu.get_tpu_info()
        cap = int(getattr(info, "vmem_capacity_bytes", 0)) or cap
    except Exception:
        pass
    return int(min(max(32 << 20, int(cap * 0.6)), 96 << 20))


def _compiler_params(n_axes):
    return pltpu.CompilerParams(
        dimension_semantics=("parallel",) * n_axes,
        vmem_limit_bytes=_vmem_limit_bytes())


def _row_tile(nrows, bytes_per_row, target_bytes, max_rows=4096):
    """Largest multiple-of-8 divisor of nrows whose block fits target_bytes."""
    if nrows % 8:
        return nrows                      # full extent satisfies the (8,128) rule
    cap = min(nrows, max_rows, max(8, target_bytes // max(bytes_per_row, 1)))
    cap = max(8, cap - cap % 8)
    for d in range(cap, 7, -8):
        if nrows % d == 0:
            return d
    return 8


def _conv2_row_tile(H, W, P, use_im2col, esz, budget_bytes):
    """Largest divisor of H whose pad/col/out footprint fits budget_bytes."""
    best = 1
    for th in range(1, H + 1):
        if H % th:
            continue
        pad_b = (th + 2) * (W + 2) * P * esz
        col_b = th * W * 9 * P * esz if use_im2col else 0
        out_b = 2 * th * W * P * esz          # double-buffered output block
        if pad_b + col_b + out_b <= budget_bytes:
            best = th
    return best


# --------------------------------------------------------------------------
# pass 1: conv1 (1x1) + BN1 partial stats (one-pass: sum, sum of squares)
# --------------------------------------------------------------------------
def _conv1_kernel(x_ref, w1_ref, h1_ref, st_ref):
    h = jnp.dot(x_ref[...], w1_ref[...], preferred_element_type=jnp.float32)
    h1_ref[...] = h.astype(h1_ref.dtype)
    P = h.shape[1]
    st_ref[0:1, 0:1, :] = jnp.sum(h, axis=0, keepdims=True).reshape(1, 1, P)
    st_ref[0:1, 1:2, :] = jnp.sum(h * h, axis=0, keepdims=True).reshape(1, 1, P)


# --------------------------------------------------------------------------
# pass 2: bn1 + relu + conv2 (3x3, stride=1, pad=1) + BN2 partial stats.
# grid = (N, H // TH): each step builds a (TH+2, W+2, P) padded tile whose
# 1-row halo is sliced from the full-image h1 block resident in VMEM, then
#   * im2col -> one K=9P MXU matmul          (small P, K-occupancy), or
#   * 9 accumulating K=P matmuls             (P >= 64, no extra VMEM traffic).
# --------------------------------------------------------------------------
def _conv2_body(h1_ref, w2_ref, s1_ref, b1_ref, h2_ref, st_ref, pad_ref, col_ref):
    _, H, W, P = h1_ref.shape
    TH = h2_ref.shape[1]
    t = pl.program_id(1)
    nt = pl.num_programs(1)
    r0 = pl.multiple_of(t * TH, TH)
    cdt = pad_ref.dtype

    s1 = s1_ref[...].reshape(1, 1, 1, P)
    b1 = b1_ref[...].reshape(1, 1, 1, P)

    def bn1_relu_rows(start, k):                          # -> (k, W, P) in cdt
        rows = h1_ref[:, pl.ds(start, k), :, :].astype(jnp.float32)
        return jnp.maximum(rows * s1 + b1, 0.0).reshape(k, W, P).astype(cdt)

    # interior rows of the padded tile (fully rewritten every step)
    pad_ref[1:TH + 1, 1:W + 1, :] = bn1_relu_rows(r0, TH)

    zrow = jnp.zeros((1, W, P), cdt)

    @pl.when(t > 0)
    def _():
        pad_ref[0:1, 1:W + 1, :] = bn1_relu_rows(r0 - 1, 1)      # top halo row

    @pl.when(t == 0)
    def _():
        pad_ref[0:1, 1:W + 1, :] = zrow                          # image top edge

    @pl.when(t < nt - 1)
    def _():
        pad_ref[TH + 1:TH + 2, 1:W + 1, :] = bn1_relu_rows(r0 + TH, 1)

    @pl.when(t == nt - 1)
    def _():
        pad_ref[TH + 1:TH + 2, 1:W + 1, :] = zrow                # image bottom edge

    # left / right zero columns: tiny, rewritten every step so the kernel is
    # safe when the grid is split across TensorCores (scratch is per-core).
    zcol = jnp.zeros((TH + 2, 1, P), cdt)
    pad_ref[:, 0:1, :] = zcol
    pad_ref[:, W + 1:W + 2, :] = zcol

    HWt = TH * W
    if col_ref is not None:
        # im2col into a single (HWt, 9P) LHS -> one K=9P MXU contraction.
        for k in range(9):
            ky, kx = divmod(k, 3)
            col_ref[:, k * P:(k + 1) * P] = (
                pad_ref[ky:ky + TH, kx:kx + W, :].reshape(HWt, P))
        h2 = jnp.dot(col_ref[...], w2_ref[...], preferred_element_type=jnp.float32)
    else:
        # 9 accumulating K=P matmuls straight out of the pad scratch.
        h2 = jnp.zeros((HWt, w2_ref.shape[1]), jnp.float32)
        for k in range(9):
            ky, kx = divmod(k, 3)
            lhs = pad_ref[ky:ky + TH, kx:kx + W, :].reshape(HWt, P)
            h2 = h2 + jnp.dot(lhs, w2_ref[k * P:(k + 1) * P, :],
                              preferred_element_type=jnp.float32)

    h2_ref[...] = h2.reshape(1, TH, W, P).astype(h2_ref.dtype)
    Pout = h2.shape[1]
    st_ref[0:1, 0:1, :] = jnp.sum(h2, axis=0, keepdims=True).reshape(1, 1, Pout)
    st_ref[0:1, 1:2, :] = jnp.sum(h2 * h2, axis=0, keepdims=True).reshape(1, 1, Pout)


def _conv2_kernel_im2col(h1_ref, w2_ref, s1_ref, b1_ref, h2_ref, st_ref,
                         pad_ref, col_ref):
    _conv2_body(h1_ref, w2_ref, s1_ref, b1_ref, h2_ref, st_ref, pad_ref, col_ref)


def _conv2_kernel_direct(h1_ref, w2_ref, s1_ref, b1_ref, h2_ref, st_ref, pad_ref):
    _conv2_body(h1_ref, w2_ref, s1_ref, b1_ref, h2_ref, st_ref, pad_ref, None)


# --------------------------------------------------------------------------
# pass 3: bn2 + relu + conv3 (1x1) + BN3 partial stats
# --------------------------------------------------------------------------
def _conv3_kernel(h2_ref, s2_ref, b2_ref, w3_ref, h3_ref, st_ref):
    y = jnp.maximum(h2_ref[...].astype(jnp.float32) * s2_ref[...] + b2_ref[...], 0.0)
    h = jnp.dot(y.astype(w3_ref.dtype), w3_ref[...],
                preferred_element_type=jnp.float32)
    h3_ref[...] = h.astype(h3_ref.dtype)
    C = h.shape[1]
    st_ref[0:1, 0:1, :] = jnp.sum(h, axis=0, keepdims=True).reshape(1, 1, C)
    st_ref[0:1, 1:2, :] = jnp.sum(h * h, axis=0, keepdims=True).reshape(1, 1, C)


# --------------------------------------------------------------------------
# pass 4: bn3 + FiLM + residual + relu on lane-dense (1, TH, W*C4) slabs;
# per-sample FiLM params are selected by the index_map (no in-kernel slice).
# --------------------------------------------------------------------------
def _film_residual_kernel(h3_ref, x_ref, s3_ref, b3_ref, g_ref, bt_ref, o_ref):
    y = h3_ref[...].astype(jnp.float32) * s3_ref[...] + b3_ref[...]   # folded BN3
    y = y * g_ref[...] + bt_ref[...]                                  # FiLM
    o_ref[...] = jnp.maximum(y + x_ref[...], 0.0)                     # residual+relu


# --------------------------------------------------------------------------
# host-side helpers
# --------------------------------------------------------------------------
def _fold_bn(stats, count, g, b):
    """Reduce per-tile [sum; sum_sq] partials -> per-channel (scale, bias)."""
    s = jnp.sum(stats[:, 0, :], axis=0)
    ss = jnp.sum(stats[:, 1, :], axis=0)
    mean = s / count
    var = jnp.maximum(ss / count - mean * mean, 0.0)   # biased (training-mode BN)
    rstd = lax.rsqrt(var + EPS)
    gv = g.reshape(-1)
    scale = (gv * rstd).reshape(1, -1)
    bias = (b.reshape(-1) - mean * gv * rstd).reshape(1, -1)
    return scale, bias


def _bottleneck_nhwc(x, params, gamma, beta, compute_dtype=jnp.float32):
    w1, g1, b1, w2, g2, b2, w3, g3, b3 = params
    N, H, W, Cin = x.shape
    P = w1.shape[1]
    C4 = w3.shape[1]
    assert Cin == C4, "residual add requires inplanes == planes * expansion"

    cdt = jnp.dtype(compute_dtype)
    esz = cdt.itemsize
    vmem = _vmem_limit_bytes()
    blk_target = min(vmem // 4, 16 << 20)

    NHW = N * H * W
    x = x.astype(jnp.float32)

    # ---- pass 1: conv1 (1x1) + BN1 stats -----------------------------------
    x2 = x.reshape(NHW, Cin).astype(cdt)
    TR1 = _row_tile(NHW, 2 * (Cin + P) * esz, blk_target)
    nt1 = NHW // TR1
    h1, st1 = pl.pallas_call(
        _conv1_kernel,
        out_shape=(jax.ShapeDtypeStruct((NHW, P), cdt),
                   jax.ShapeDtypeStruct((nt1, 2, P), jnp.float32)),
        grid=(nt1,),
        in_specs=[pl.BlockSpec((TR1, Cin), lambda i: (i, 0)),
                  pl.BlockSpec((Cin, P), lambda i: (0, 0))],
        out_specs=(pl.BlockSpec((TR1, P), lambda i: (i, 0)),
                   pl.BlockSpec((1, 2, P), lambda i: (i, 0, 0))),
        compiler_params=_compiler_params(1),
        cost_estimate=pl.CostEstimate(
            flops=2 * NHW * Cin * P, transcendentals=0,
            bytes_accessed=esz * (NHW * Cin + NHW * P + Cin * P)),
    )(x2, w1.astype(cdt))
    scale1, bias1 = _fold_bn(st1, NHW, g1, b1)

    # ---- pass 2: bn1+relu + conv2 (3x3) + BN2 stats -------------------------
    use_im2col = P < 64
    fixed = 2 * H * W * P * esz + 2 * 9 * P * P * esz      # h1 image + weights
    TH2 = _conv2_row_tile(H, W, P, use_im2col, esz,
                          max(1 << 20, vmem // 3 - fixed))
    HT = H // TH2
    h1n = h1.reshape(N, H, W, P)
    w2f = w2.reshape(9 * P, P).astype(cdt)                 # (ky, kx, cin) rows
    scratch = [pltpu.VMEM((TH2 + 2, W + 2, P), cdt)]
    if use_im2col:
        scratch.append(pltpu.VMEM((TH2 * W, 9 * P), cdt))
    kernel2 = _conv2_kernel_im2col if use_im2col else _conv2_kernel_direct
    h2n, st2 = pl.pallas_call(
        kernel2,
        out_shape=(jax.ShapeDtypeStruct((N, H, W, P), cdt),
                   jax.ShapeDtypeStruct((N * HT, 2, P), jnp.float32)),
        grid=(N, HT),
        in_specs=[pl.BlockSpec((1, H, W, P), lambda n, t: (n, 0, 0, 0)),
                  pl.BlockSpec((9 * P, P), lambda n, t: (0, 0)),
                  pl.BlockSpec((1, P), lambda n, t: (0, 0)),
                  pl.BlockSpec((1, P), lambda n, t: (0, 0))],
        out_specs=(pl.BlockSpec((1, TH2, W, P), lambda n, t: (n, t, 0, 0)),
                   pl.BlockSpec((1, 2, P), lambda n, t: (n * HT + t, 0, 0))),
        scratch_shapes=scratch,
        compiler_params=_compiler_params(2),
        cost_estimate=pl.CostEstimate(
            flops=2 * NHW * 9 * P * P, transcendentals=0,
            bytes_accessed=esz * (2 * NHW * P + 9 * P * P)),
    )(h1n, w2f, scale1, bias1)
    scale2, bias2 = _fold_bn(st2, NHW, g2, b2)

    # ---- pass 3: bn2+relu + conv3 (1x1) + BN3 stats -------------------------
    h2 = h2n.reshape(NHW, P)
    TR3 = _row_tile(NHW, 2 * (P + C4) * esz, blk_target)
    nt3 = NHW // TR3
    h3, st3 = pl.pallas_call(
        _conv3_kernel,
        out_shape=(jax.ShapeDtypeStruct((NHW, C4), cdt),
                   jax.ShapeDtypeStruct((nt3, 2, C4), jnp.float32)),
        grid=(nt3,),
        in_specs=[pl.BlockSpec((TR3, P), lambda i: (i, 0)),
                  pl.BlockSpec((1, P), lambda i: (0, 0)),
                  pl.BlockSpec((1, P), lambda i: (0, 0)),
                  pl.BlockSpec((P, C4), lambda i: (0, 0))],
        out_specs=(pl.BlockSpec((TR3, C4), lambda i: (i, 0)),
                   pl.BlockSpec((1, 2, C4), lambda i: (i, 0, 0))),
        compiler_params=_compiler_params(1),
        cost_estimate=pl.CostEstimate(
            flops=2 * NHW * P * C4, transcendentals=0,
            bytes_accessed=esz * (NHW * P + NHW * C4 + P * C4)),
    )(h2, scale2, bias2, w3.astype(cdt))
    scale3, bias3 = _fold_bn(st3, NHW, g3, b3)

    # ---- pass 4: bn3 + FiLM + residual + relu (lane-dense slabs) -------------
    WC = W * C4
    TH4 = _row_tile(H, 6 * WC * 4, blk_target, max_rows=H)
    ht = H // TH4
    h3s = h3.reshape(N, H, WC)
    xs = x.reshape(N, H, WC)
    # tiny per-channel vectors replicated across W so the slab math stays
    # lane-dense; a few KB of HBM at most.
    s3s = jnp.tile(scale3, (1, W)).reshape(1, 1, WC)
    b3s = jnp.tile(bias3, (1, W)).reshape(1, 1, WC)
    gms = jnp.tile(gamma.astype(jnp.float32), (1, W)).reshape(N, 1, WC)
    bts = jnp.tile(beta.astype(jnp.float32), (1, W)).reshape(N, 1, WC)
    outs = pl.pallas_call(
        _film_residual_kernel,
        out_shape=jax.ShapeDtypeStruct((N, H, WC), jnp.float32),
        grid=(N, ht),
        in_specs=[pl.BlockSpec((1, TH4, WC), lambda n, t: (n, t, 0)),
                  pl.BlockSpec((1, TH4, WC), lambda n, t: (n, t, 0)),
                  pl.BlockSpec((1, 1, WC), lambda n, t: (0, 0, 0)),
                  pl.BlockSpec((1, 1, WC), lambda n, t: (0, 0, 0)),
                  pl.BlockSpec((1, 1, WC), lambda n, t: (n, 0, 0)),
                  pl.BlockSpec((1, 1, WC), lambda n, t: (n, 0, 0))],
        out_specs=pl.BlockSpec((1, TH4, WC), lambda n, t: (n, t, 0)),
        compiler_params=_compiler_params(2),
        cost_estimate=pl.CostEstimate(
            flops=7 * N * H * WC, transcendentals=0,
            bytes_accessed=4 * 3 * N * H * WC),
    )(h3s, xs, s3s, b3s, gms, bts)
    return outs.reshape(N, H, W, C4)


def bottleneck_forward(x_nchw, params, gamma, beta, compute_dtype=jnp.float32):
    """x_nchw: (N, Cin, H, W); gamma/beta: (N, Cin) FiLM parameters.

    compute_dtype=jnp.bfloat16 runs the three matmuls (and stores the h1/h2/h3
    intermediates) in bf16 for MXU peak and half the inter-pass HBM traffic;
    BN statistics, folding and the final FiLM/residual stay in f32.  Default
    f32 keeps 1e-3 parity with the reference.  Callers that already hold NHWC
    data should call _bottleneck_nhwc directly and skip the two transposes.
    """
    x = jnp.transpose(x_nchw, (0, 2, 3, 1)).astype(jnp.float32)    # NHWC
    out = _bottleneck_nhwc(x, params, gamma, beta, compute_dtype)
    return jnp.transpose(out, (0, 3, 1, 2))                        # back to NCHW


def init_params(key, inplanes, planes):
    """Deterministic synthetic init matching the module's parameter shapes."""
    expansion = 4
    k1, k2, k3 = jax.random.split(key, 3)
    w1 = jax.random.normal(k1, (inplanes, planes), jnp.float32) * 0.1          # 1x1
    w2 = jax.random.normal(k2, (3, 3, planes, planes), jnp.float32) * 0.1      # HWIO
    w3 = jax.random.normal(k3, (planes, planes * expansion), jnp.float32) * 0.1
    g1 = jnp.ones((1, planes), jnp.float32);             b1 = jnp.zeros((1, planes), jnp.float32)
    g2 = jnp.ones((1, planes), jnp.float32);             b2 = jnp.zeros((1, planes), jnp.float32)
    g3 = jnp.ones((1, planes * expansion), jnp.float32); b3 = jnp.zeros((1, planes * expansion), jnp.float32)
    return (w1, g1, b1, w2, g2, b2, w3, g3, b3)


def bottleneck_reference(x_nchw, params, gamma, beta):
    """Pure-JAX reference (same math, NHWC, lax conv) used as a correctness check."""
    w1, g1, b1, w2, g2, b2, w3, g3, b3 = params
    x = jnp.transpose(x_nchw, (0, 2, 3, 1)).astype(jnp.float32)

    def bn(h, g, b):
        mean = jnp.mean(h, axis=(0, 1, 2), keepdims=True)
        var = jnp.mean(jnp.square(h - mean), axis=(0, 1, 2), keepdims=True)
        return (h - mean) * lax.rsqrt(var + EPS) * g.reshape(1, 1, 1, -1) + b.reshape(1, 1, 1, -1)

    h = jnp.einsum('nhwc,co->nhwo', x, w1)
    h = jax.nn.relu(bn(h, g1, b1))
    h = lax.conv_general_dilated(h, w2, (1, 1), 'SAME',
                                 dimension_numbers=('NHWC', 'HWIO', 'NHWC'))
    h = jax.nn.relu(bn(h, g2, b2))
    h = jnp.einsum('nhwc,co->nhwo', h, w3)
    h = bn(h, g3, b3)
    h = h * gamma[:, None, None, :] + beta[:, None, None, :]
    out = jax.nn.relu(h + x)
    return jnp.transpose(out, (0, 3, 1, 2))


if __name__ == "__main__":
    key = jax.random.PRNGKey(0)
    kx, kg, kb, kp = jax.random.split(key, 4)

    # small shapes consistent with the module: inplanes = planes * expansion
    N, planes, H, W = 2, 4, 16, 16
    inplanes = planes * 4          # 16

    x = jax.random.normal(kx, (N, inplanes, H, W), jnp.float32)
    gamma = jax.random.normal(kg, (N, inplanes), jnp.float32)
    beta = jax.random.normal(kb, (N, inplanes), jnp.float32)
    params = init_params(kp, inplanes, planes)

    out = bottleneck_forward(x, params, gamma, beta)
    out = jax.block_until_ready(out)

    ref = bottleneck_reference(x, params, gamma, beta)
    assert out.shape == (N, inplanes, H, W)
    assert bool(jnp.allclose(out, ref, atol=1e-3, rtol=1e-3)), "kernel mismatch vs reference"

    print("KERNEL_OK")
</pallas_src>

<mosaic_0001>
module attributes {stable_mosaic.version = 11 : i64} {
  func.func @_conv1_kernel(%arg0: i32, %arg1: memref<512x16xf32, #tpu.memory_space<vmem>>, %arg2: memref<16x4xf32, #tpu.memory_space<vmem>>, %arg3: memref<512x4xf32, #tpu.memory_space<vmem>>, %arg4: memref<1x2x4xf32, #tpu.memory_space<vmem>>) attributes {dimension_semantics = [#tpu.dimension_semantics<parallel>], iteration_bounds = array<i64: 1>, scalar_prefetch = 0 : i64, scratch_operands = 0 : i64, tpu.core_type = #tpu.core_type<tc>, window_params = [{transform_indices = @transform_0, window_bounds = array<i64: 512, 16>}, {pipeline_mode = #tpu.pipeline_mode<synchronous>, transform_indices = @transform_1, window_bounds = array<i64: 16, 4>}, {transform_indices = @transform_2, window_bounds = array<i64: 512, 4>}, {transform_indices = @transform_3, window_bounds = array<i64: 1, 2, 4>}]} {
    %c0 = arith.constant 0 : index
    %c0_0 = arith.constant 0 : index
    %0 = vector.load %arg1[%c0, %c0_0] : memref<512x16xf32, #tpu.memory_space<vmem>>, vector<512x16xf32>
    %c0_1 = arith.constant 0 : index
    %c0_2 = arith.constant 0 : index
    %1 = vector.load %arg2[%c0_1, %c0_2] : memref<16x4xf32, #tpu.memory_space<vmem>>, vector<16x4xf32>
    %cst = arith.constant dense<0.000000e+00> : vector<512x4xf32>
    %2 = tpu.matmul %0, %1, %cst {dimension_numbers = #tpu.dot_dimension_numbers<[1], [0], [0], [1], [0, 0, 1, 1], [], []>} : vector<512x16xf32>, vector<16x4xf32>, vector<512x4xf32> -> vector<512x4xf32>
    %c0_3 = arith.constant 0 : index
    %c0_4 = arith.constant 0 : index
    %3 = vector.load %arg3[%c0_3, %c0_4] : memref<512x4xf32, #tpu.memory_space<vmem>>, vector<512x4xf32>
    tpu.vector_store %arg3[%c0_3, %c0_4], %2 {strides = array<i32>} : memref<512x4xf32, #tpu.memory_space<vmem>>, vector<512x4xf32>,
    %cst_5 = arith.constant dense<0.000000e+00> : vector<4xf32>
    %4 = vector.multi_reduction <add>, %2, %cst_5 [0] : vector<512x4xf32> to vector<4xf32>
    %5 = vector.shape_cast %4 : vector<4xf32> to vector<1x4xf32>
    %6 = vector.shape_cast %5 : vector<1x4xf32> to vector<1x1x4xf32>
    %c0_6 = arith.constant 0 : index
    %c0_7 = arith.constant 0 : index
    %c0_8 = arith.constant 0 : index
    %7 = vector.load %arg4[%c0_6, %c0_7, %c0_8] : memref<1x2x4xf32, #tpu.memory_space<vmem>>, vector<1x1x4xf32>
    tpu.vector_store %arg4[%c0_6, %c0_7, %c0_8], %6 {strides = array<i32>} : memref<1x2x4xf32, #tpu.memory_space<vmem>>, vector<1x1x4xf32>,
    %8 = arith.mulf %2, %2 : vector<512x4xf32>
    %cst_9 = arith.constant dense<0.000000e+00> : vector<4xf32>
    %9 = vector.multi_reduction <add>, %8, %cst_9 [0] : vector<512x4xf32> to vector<4xf32>
    %10 = vector.shape_cast %9 : vector<4xf32> to vector<1x4xf32>
    %11 = vector.shape_cast %10 : vector<1x4xf32> to vector<1x1x4xf32>
    %c0_10 = arith.constant 0 : index
    %c1 = arith.constant 1 : index
    %c0_11 = arith.constant 0 : index
    %12 = vector.load %arg4[%c0_10, %c1, %c0_11] : memref<1x2x4xf32, #tpu.memory_space<vmem>>, vector<1x1x4xf32>
    tpu.vector_store %arg4[%c0_10, %c1, %c0_11], %11 {strides = array<i32>} : memref<1x2x4xf32, #tpu.memory_space<vmem>>, vector<1x1x4xf32>,
    return
  }
  func.func @transform_0(%arg0: i32) -> (i32, i32) {
    %c0_i32 = arith.constant 0 : i32
    %c0_i32_0 = arith.constant 0 : i32
    return %arg0, %c0_i32 : i32, i32
  }
  func.func @transform_1(%arg0: i32) -> (i32, i32) {
    %c0_i32 = arith.constant 0 : i32
    %c0_i32_0 = arith.constant 0 : i32
    %c0_i32_1 = arith.constant 0 : i32
    return %c0_i32, %c0_i32_0 : i32, i32
  }
  func.func @transform_2(%arg0: i32) -> (i32, i32) {
    %c0_i32 = arith.constant 0 : i32
    %c0_i32_0 = arith.constant 0 : i32
    return %arg0, %c0_i32 : i32, i32
  }
  func.func @transform_3(%arg0: i32) -> (i32, i32, i32) {
    %c0_i32 = arith.constant 0 : i32
    %c0_i32_0 = arith.constant 0 : i32
    %c0_i32_1 = arith.constant 0 : i32
    return %arg0, %c0_i32, %c0_i32_0 : i32, i32, i32
  }
}

</mosaic_0001>

<bundles_post_ra>
// kernel: tpu_custom_call.1
= control target key start
LH: loop header
LB: loop body
LE: loop exit
PB: predicated region body
PF: predicated region fallthrough
CT: control target
= control target key end

     0   :  { %vm80_vm0 = vcmask 130048   ;;  %s1961_s0 = inlined_call_operand.vmem [shape: f32[512,16], index: 0, kind: input, shape index: {}]   ;;  %s1962_s1 = inlined_call_operand.vmem [shape: f32[16,4], index: 1, kind: input, shape index: {}]   ;;  %s1963_s2 = inlined_call_operand.vmem [shape: f32[512,4], index: 2, kind: output, shape index: {0}]   ;;  %s1964_s3 = inlined_call_operand.hbm [shape: f32[1,2,4], index: 3, kind: output, shape index: {1}]  }
   0x1   :  { %v79_v0 = vld [vmem:[%s1962_s1 + $0x8] sm:$0xff]  ;;  %v78_v1 = vld [vmem:[%s1962_s1] sm:$0xff] }
   0x2   :  { %287 = vmatpush.msra.mxu0 %v79_v0  ;;  %v14_v2 = vld [vmem:[%s1961_s0] sm:$0xff]  ;;  %964 = vmatpush.msra.mxu1 %v79_v0 }
   0x3   :  { %965 = vmatpush.msra.mxu2 %v79_v0  ;;  %966 = vmatpush.msra.mxu3 %v79_v0 }
   0x4   :  { %9 = vsyncpa [#allocation3], 0  ;;  %288 = vmatpush.msra.mxu0 %v78_v1  ;;  %967 = vmatpush.msra.mxu1 %v78_v1  ;;  %v30_v3 = vld [vmem:[%s1961_s0 + $0x80] sm:$0xff]  ;;  %v15_v4 = vld [vmem:[%s1961_s0 + $0x8] sm:$0xff]  ;;  %vm482_vm1 = vcmask 31744   ;;  %vm680_vm2 = vcmask 24576  }
   0x5   :  { %900 = vmatmul.msk.f32.vlgmr.msra.gmra.mxu0 %vm80_vm0, %v14_v2  ;;  %916 = vmatmul.msk.f32.vlgmr.msra.gmra.mxu1 %vm80_vm0, %v30_v3  ;;  %v31_v5 = vld [vmem:[%s1961_s0 + $0x88] sm:$0xff]  ;;  %v16_v6 = vld [vmem:[%s1961_s0 + $0x10] sm:$0xff]  ;;  %v17_v8 = vld [vmem:[%s1961_s0 + $0x18] sm:$0xff]  ;;  %s889_s19 = sshll.u32 %s1964_s3, 4  ;;  %s890_s19 = int_to_ptr.hbm [resolvable:$true] %s889_s19 }
   0x6   :  { %968 = vmatpush.msra.mxu2 %v78_v1  ;;  %969 = vmatpush.msra.mxu3 %v78_v1  ;;  %v32_v7 = vld [vmem:[%s1961_s0 + $0x90] sm:$0xff]  ;;  %v33_v9 = vld [vmem:[%s1961_s0 + $0x98] sm:$0xff]  ;;  %v46_v10 = vld [vmem:[%s1961_s0 + $0x100] sm:$0xff] }
   0x7   :  { %932 = vmatmul.msk.f32.vlgmr.msra.gmra.mxu2 %vm80_vm0, %v46_v10  ;;  %v18_v11 = vld [vmem:[%s1961_s0 + $0x20] sm:$0xff]  ;;  %v47_v13 = vld [vmem:[%s1961_s0 + $0x108] sm:$0xff]  ;;  %v48_v16 = vld [vmem:[%s1961_s0 + $0x110] sm:$0xff] }
   0x8   :  { %v34_v12 = vld [vmem:[%s1961_s0 + $0xa0] sm:$0xff]  ;;  %v19_v14 = vld [vmem:[%s1961_s0 + $0x28] sm:$0xff]  ;;  %v20_v17 = vld [vmem:[%s1961_s0 + $0x30] sm:$0xff] }
   0x9   :  { %v35_v15 = vld [vmem:[%s1961_s0 + $0xa8] sm:$0xff]  ;;  %v36_v18 = vld [vmem:[%s1961_s0 + $0xb0] sm:$0xff]  ;;  %v49_v19 = vld [vmem:[%s1961_s0 + $0x118] sm:$0xff] }
   0xa   :  { %v21_v20 = vld [vmem:[%s1961_s0 + $0x38] sm:$0xff]  ;;  %v50_v22 = vld [vmem:[%s1961_s0 + $0x120] sm:$0xff]  ;;  %v51_v26 = vld [vmem:[%s1961_s0 + $0x128] sm:$0xff] }
   0xb   :  { %v37_v21 = vld [vmem:[%s1961_s0 + $0xb8] sm:$0xff]  ;;  %v62_v23 = vld [vmem:[%s1961_s0 + $0x180] sm:$0xff]  ;;  %v63_v27 = vld [vmem:[%s1961_s0 + $0x188] sm:$0xff] }
   0xc   :  { %948 = vmatmul.msk.f32.vlgmr.msra.gmra.mxu3 %vm80_vm0, %v62_v23  ;;  %v22_v24 = vld [vmem:[%s1961_s0 + $0x40] sm:$0xff]  ;;  %v23_v28 = vld [vmem:[%s1961_s0 + $0x48] sm:$0xff]  ;;  %v52_v30 = vld [vmem:[%s1961_s0 + $0x130] sm:$0xff] }
   0xd   :  { %901 = vmatmul.msk.f32.gmra.mxu0 %vm80_vm0, %v15_v4  ;;  %917 = vmatmul.msk.f32.gmra.mxu1 %vm80_vm0, %v31_v5  ;;  %v38_v25 = vld [vmem:[%s1961_s0 + $0xc0] sm:$0xff]  ;;  %v39_v29 = vld [vmem:[%s1961_s0 + $0xc8] sm:$0xff]  ;;  %v64_v31 = vld [vmem:[%s1961_s0 + $0x190] sm:$0xff] }
   0xe   :  { %v24_v32 = vld [vmem:[%s1961_s0 + $0x50] sm:$0xff]  ;;  %v53_v34 = vld [vmem:[%s1961_s0 + $0x138] sm:$0xff]  ;;  %v54_v38 = vld [vmem:[%s1961_s0 + $0x140] sm:$0xff] }
   0xf   :  { %933 = vmatmul.msk.f32.gmra.mxu2 %vm80_vm0, %v47_v13  ;;  %v40_v33 = vld [vmem:[%s1961_s0 + $0xd0] sm:$0xff]  ;;  %v65_v35 = vld [vmem:[%s1961_s0 + $0x198] sm:$0xff]  ;;  %v66_v39 = vld [vmem:[%s1961_s0 + $0x1a0] sm:$0xff] }
  0x10   :  { %v25_v36 = vld [vmem:[%s1961_s0 + $0x58] sm:$0xff]  ;;  %v26_v40 = vld [vmem:[%s1961_s0 + $0x60] sm:$0xff]  ;;  %v55_v42 = vld [vmem:[%s1961_s0 + $0x148] sm:$0xff] }
  0x11   :  { %v41_v37 = vld [vmem:[%s1961_s0 + $0xd8] sm:$0xff]  ;;  %v42_v41 = vld [vmem:[%s1961_s0 + $0xe0] sm:$0xff]  ;;  %v67_v43 = vld [vmem:[%s1961_s0 + $0x1a8] sm:$0xff] }
  0x12   :  { %v27_v44 = vld [vmem:[%s1961_s0 + $0x68] sm:$0xff]  ;;  %v56_v46 = vld [vmem:[%s1961_s0 + $0x150] sm:$0xff]  ;;  %v57_v50 = vld [vmem:[%s1961_s0 + $0x158] sm:$0xff] }
  0x13   :  { %v43_v45 = vld [vmem:[%s1961_s0 + $0xe8] sm:$0xff]  ;;  %v68_v47 = vld [vmem:[%s1961_s0 + $0x1b0] sm:$0xff]  ;;  %v69_v51 = vld [vmem:[%s1961_s0 + $0x1b8] sm:$0xff] }
  0x14   :  { %949 = vmatmul.msk.f32.gmra.mxu3 %vm80_vm0, %v63_v27  ;;  %v28_v48 = vld [vmem:[%s1961_s0 + $0x70] sm:$0xff]  ;;  %v29_v52 = vld [vmem:[%s1961_s0 + $0x78] sm:$0xff]  ;;  %v58_v54 = vld [vmem:[%s1961_s0 + $0x160] sm:$0xff] }
  0x15   :  { %902 = vmatmul.msk.f32.gmra.mxu0 %vm80_vm0, %v16_v6  ;;  %918 = vmatmul.msk.f32.gmra.mxu1 %vm80_vm0, %v32_v7  ;;  %v44_v49 = vld [vmem:[%s1961_s0 + $0xf0] sm:$0xff]  ;;  %v45_v53 = vld [vmem:[%s1961_s0 + $0xf8] sm:$0xff]  ;;  %v70_v55 = vld [vmem:[%s1961_s0 + $0x1c0] sm:$0xff] }
  0x16   :  { %v59_v58 = vld [vmem:[%s1961_s0 + $0x168] sm:$0xff]  ;;  %v60_v6 = vld [vmem:[%s1961_s0 + $0x170] sm:$0xff] }
  0x17   :  { %934 = vmatmul.msk.f32.gmra.mxu2 %vm80_vm0, %v48_v16  ;;  %v71_v59 = vld [vmem:[%s1961_s0 + $0x1c8] sm:$0xff]  ;;  %v72_v7 = vld [vmem:[%s1961_s0 + $0x1d0] sm:$0xff]  ;;  %v73_v16 = vld [vmem:[%s1961_s0 + $0x1d8] sm:$0xff] }
  0x1c   :  { %950 = vmatmul.msk.f32.gmra.mxu3 %vm80_vm0, %v64_v31 }
  0x1d   :  { %903 = vmatmul.msk.f32.gmra.mxu0 %vm80_vm0, %v17_v8  ;;  %919 = vmatmul.msk.f32.gmra.mxu1 %vm80_vm0, %v33_v9 }
  0x1f   :  { %935 = vmatmul.msk.f32.gmra.mxu2 %vm80_vm0, %v49_v19 }
  0x24   :  { %951 = vmatmul.msk.f32.gmra.mxu3 %vm80_vm0, %v65_v35 }
  0x25   :  { %904 = vmatmul.msk.f32.gmra.mxu0 %vm80_vm0, %v18_v11  ;;  %920 = vmatmul.msk.f32.gmra.mxu1 %vm80_vm0, %v34_v12 }
  0x27   :  { %936 = vmatmul.msk.f32.gmra.mxu2 %vm80_vm0, %v50_v22 }
  0x2c   :  { %952 = vmatmul.msk.f32.gmra.mxu3 %vm80_vm0, %v66_v39 }
  0x2d   :  { %905 = vmatmul.msk.f32.gmra.mxu0 %vm80_vm0, %v19_v14  ;;  %921 = vmatmul.msk.f32.gmra.mxu1 %vm80_vm0, %v35_v15  ;;  %v61_v15 = vld [vmem:[%s1961_s0 + $0x178] sm:$0xff] }
  0x2f   :  { %937 = vmatmul.msk.f32.gmra.mxu2 %vm80_vm0, %v51_v26 }
  0x34   :  { %953 = vmatmul.msk.f32.gmra.mxu3 %vm80_vm0, %v67_v43 }
  0x35   :  { %906 = vmatmul.msk.f32.gmra.mxu0 %vm80_vm0, %v20_v17  ;;  %922 = vmatmul.msk.f32.gmra.mxu1 %vm80_vm0, %v36_v18 }
  0x37   :  { %938 = vmatmul.msk.f32.gmra.mxu2 %vm80_vm0, %v52_v30 }
  0x3c   :  { %954 = vmatmul.msk.f32.gmra.mxu3 %vm80_vm0, %v68_v47 }
  0x3d   :  { %907 = vmatmul.msk.f32.gmra.mxu0 %vm80_vm0, %v21_v20  ;;  %923 = vmatmul.msk.f32.gmra.mxu1 %vm80_vm0, %v37_v21 }
  0x3f   :  { %939 = vmatmul.msk.f32.gmra.mxu2 %vm80_vm0, %v53_v34 }
  0x44   :  { %955 = vmatmul.msk.f32.gmra.mxu3 %vm80_vm0, %v69_v51 }
  0x45   :  { %908 = vmatmul.msk.f32.gmra.mxu0 %vm80_vm0, %v22_v24  ;;  %924 = vmatmul.msk.f32.gmra.mxu1 %vm80_vm0, %v38_v25  ;;  %v74_v24 = vld [vmem:[%s1961_s0 + $0x1e0] sm:$0xff] }
  0x47   :  { %940 = vmatmul.msk.f32.gmra.mxu2 %vm80_vm0, %v54_v38 }
  0x4c   :  { %956 = vmatmul.msk.f32.gmra.mxu3 %vm80_vm0, %v70_v55 }
  0x4d   :  { %909 = vmatmul.msk.f32.gmra.mxu0 %vm80_vm0, %v23_v28  ;;  %925 = vmatmul.msk.f32.gmra.mxu1 %vm80_vm0, %v39_v29 }
  0x4f   :  { %941 = vmatmul.msk.f32.gmra.mxu2 %vm80_vm0, %v55_v42 }
  0x54   :  { %957 = vmatmul.msk.f32.gmra.mxu3 %vm80_vm0, %v71_v59 }
  0x55   :  { %910 = vmatmul.msk.f32.gmra.mxu0 %vm80_vm0, %v24_v32  ;;  %926 = vmatmul.msk.f32.gmra.mxu1 %vm80_vm0, %v40_v33  ;;  %v75_v33 = vld [vmem:[%s1961_s0 + $0x1e8] sm:$0xff] }
  0x57   :  { %942 = vmatmul.msk.f32.gmra.mxu2 %vm80_vm0, %v56_v46 }
  0x5c   :  { %958 = vmatmul.msk.f32.gmra.mxu3 %vm80_vm0, %v72_v7 }
  0x5d   :  { %911 = vmatmul.msk.f32.gmra.mxu0 %vm80_vm0, %v25_v36  ;;  %927 = vmatmul.msk.f32.gmra.mxu1 %vm80_vm0, %v41_v37  ;;  %v76_v37 = vld [vmem:[%s1961_s0 + $0x1f0] sm:$0xff] }
  0x5f   :  { %943 = vmatmul.msk.f32.gmra.mxu2 %vm80_vm0, %v57_v50 }
  0x64   :  { %959 = vmatmul.msk.f32.gmra.mxu3 %vm80_vm0, %v73_v16 }
  0x65   :  { %912 = vmatmul.msk.f32.gmra.mxu0 %vm80_vm0, %v26_v40  ;;  %928 = vmatmul.msk.f32.gmra.mxu1 %vm80_vm0, %v42_v41  ;;  %v77_v41 = vld [vmem:[%s1961_s0 + $0x1f8] sm:$0xff] }
  0x67   :  { %944 = vmatmul.msk.f32.gmra.mxu2 %vm80_vm0, %v58_v54 }
  0x6c   :  { %960 = vmatmul.msk.f32.gmra.mxu3 %vm80_vm0, %v74_v24 }
  0x6d   :  { %913 = vmatmul.msk.f32.gmra.mxu0 %vm80_vm0, %v27_v44  ;;  %929 = vmatmul.msk.f32.gmra.mxu1 %vm80_vm0, %v43_v45 }
  0x6f   :  { %945 = vmatmul.msk.f32.gmra.mxu2 %vm80_vm0, %v59_v58 }
  0x74   :  { %961 = vmatmul.msk.f32.gmra.mxu3 %vm80_vm0, %v75_v33 }
  0x75   :  { %914 = vmatmul.msk.f32.gmra.mxu0 %vm80_vm0, %v28_v48  ;;  %930 = vmatmul.msk.f32.gmra.mxu1 %vm80_vm0, %v44_v49 }
  0x77   :  { %946 = vmatmul.msk.f32.gmra.mxu2 %vm80_vm0, %v60_v6 }
  0x7c   :  { %962 = vmatmul.msk.f32.gmra.mxu3 %vm80_vm0, %v76_v37 }
  0x7d   :  { %915 = vmatmul.msk.f32.gmra.mxu0 %vm80_vm0, %v29_v52  ;;  %931 = vmatmul.msk.f32.gmra.mxu1 %vm80_vm0, %v45_v53 }
  0x7f   :  { %947 = vmatmul.msk.f32.gmra.mxu2 %vm80_vm0, %v61_v15 }
  0x82   :  { %v290_v56 = vpop.f32.mrf.mxu0  ;;  %v1240_v57 = vpop.f32.mrf.mxu1 }
  0x83   :  { %483 = vst.msk [vmem:[%s1963_s2] sm:$0xff] %vm482_vm1, %v290_v56  ;;  %v682_v60 = vmul.f32 %v290_v56, %v290_v56  ;;  %v547_v63 = vsel %vm482_vm1, %v290_v56, 0.0 }
  0x84   :  { %499 = vst.msk [vmem:[%s1963_s2 + $0x80] sm:$0xff] %vm482_vm1, %v1240_v57  ;;  %963 = vmatmul.msk.f32.gmra.mxu3 %vm80_vm0, %v77_v41 }
  0x85   :  { %v746_v3 = vsel %vm482_vm1, %v682_v60, 0.0 }
  0x8a   :  { %v293_v61 = vpop.f32.mrf.mxu0  ;;  %v1259_v62 = vpop.f32.mrf.mxu1 }
  0x8b   :  { %484 = vst.msk [vmem:[%s1963_s2 + $0x8] sm:$0xff] %vm482_vm1, %v293_v61  ;;  %v548_v0 = vsel %vm482_vm1, %v293_v61, 0.0  ;;  %v683_v1 = vmul.f32 %v293_v61, %v293_v61  ;;  %v1327_v29 = vpop.f32.mrf.mxu2 }
  0x8c   :  { %v549_v2 = vadd.f32 %v548_v0, %v547_v63  ;;  %500 = vst.msk [vmem:[%s1963_s2 + $0x88] sm:$0xff] %vm482_vm1, %v1259_v62 }
  0x8d   :  { %v747_v4 = vsel %vm482_vm1, %v683_v1, 0.0  ;;  %515 = vst.msk [vmem:[%s1963_s2 + $0x100] sm:$0xff] %vm482_vm1, %v1327_v29 }
  0x8e   :  { %v748_v5 = vadd.f32 %v747_v4, %v746_v3 }
  0x8f   :  { %v1418_v48 = vpop.f32.mrf.mxu3 }
  0x90   :  { %531 = vst.msk [vmem:[%s1963_s2 + $0x180] sm:$0xff] %vm482_vm1, %v1418_v48 }
  0x92   :  { %v296_v8 = vpop.f32.mrf.mxu0  ;;  %v1282_v9 = vpop.f32.mrf.mxu1 }
  0x93   :  { %485 = vst.msk [vmem:[%s1963_s2 + $0x10] sm:$0xff] %vm482_vm1, %v296_v8  ;;  %v550_v10 = vsel %vm482_vm1, %v296_v8, 0.0  ;;  %v684_v11 = vmul.f32 %v296_v8, %v296_v8  ;;  %v1354_v36 = vpop.f32.mrf.mxu2 }
  0x94   :  { %v551_v12 = vadd.f32 %v550_v10, %v549_v2  ;;  %501 = vst.msk [vmem:[%s1963_s2 + $0x90] sm:$0xff] %vm482_vm1, %v1282_v9 }
  0x95   :  { %v749_v13 = vsel %vm482_vm1, %v684_v11, 0.0  ;;  %516 = vst.msk [vmem:[%s1963_s2 + $0x108] sm:$0xff] %vm482_vm1, %v1354_v36 }
  0x96   :  { %v750_v14 = vadd.f32 %v749_v13, %v748_v5 }
  0x97   :  { %v1443_v52 = vpop.f32.mrf.mxu3 }
  0x98   :  { %532 = vst.msk [vmem:[%s1963_s2 + $0x188] sm:$0xff] %vm482_vm1, %v1443_v52 }
  0x9a   :  { %v299_v17 = vpop.f32.mrf.mxu0  ;;  %v1303_v18 = vpop.f32.mrf.mxu1 }
  0x9b   :  { %486 = vst.msk [vmem:[%s1963_s2 + $0x18] sm:$0xff] %vm482_vm1, %v299_v17  ;;  %v552_v19 = vsel %vm482_vm1, %v299_v17, 0.0  ;;  %v685_v20 = vmul.f32 %v299_v17, %v299_v17  ;;  %v1376_v40 = vpop.f32.mrf.mxu2 }
  0x9c   :  { %v553_v21 = vadd.f32 %v552_v19, %v551_v12  ;;  %502 = vst.msk [vmem:[%s1963_s2 + $0x98] sm:$0xff] %vm482_vm1, %v1303_v18 }
  0x9d   :  { %v751_v22 = vsel %vm482_vm1, %v685_v20, 0.0  ;;  %517 = vst.msk [vmem:[%s1963_s2 + $0x110] sm:$0xff] %vm482_vm1, %v1376_v40 }
  0x9e   :  { %v752_v23 = vadd.f32 %v751_v22, %v750_v14 }
  0x9f   :  { %v1468_v56 = vpop.f32.mrf.mxu3 }
  0xa0   :  { %533 = vst.msk [vmem:[%s1963_s2 + $0x190] sm:$0xff] %vm482_vm1, %v1468_v56 }
  0xa2   :  { %v302_v25 = vpop.f32.mrf.mxu0  ;;  %v1320_v26 = vpop.f32.mrf.mxu1 }
  0xa3   :  { %487 = vst.msk [vmem:[%s1963_s2 + $0x20] sm:$0xff] %vm482_vm1, %v302_v25  ;;  %v554_v27 = vsel %vm482_vm1, %v302_v25, 0.0  ;;  %v686_v28 = vmul.f32 %v302_v25, %v302_v25  ;;  %v1398_v44 = vpop.f32.mrf.mxu2 }
  0xa4   :  { %v1329_v30 = vadd.f32 %v554_v27, %v553_v21  ;;  %503 = vst.msk [vmem:[%s1963_s2 + $0xa0] sm:$0xff] %vm482_vm1, %v1320_v26 }
  0xa5   :  { %v753_v31 = vsel %vm482_vm1, %v686_v28, 0.0  ;;  %518 = vst.msk [vmem:[%s1963_s2 + $0x118] sm:$0xff] %vm482_vm1, %v1398_v44 }
  0xa6   :  { %v1342_v32 = vadd.f32 %v753_v31, %v752_v23 }
  0xa7   :  { %v1493_v61 = vpop.f32.mrf.mxu3 }
  0xa8   :  { %534 = vst.msk [vmem:[%s1963_s2 + $0x198] sm:$0xff] %vm482_vm1, %v1493_v61 }
  0xaa   :  { %v305_v34 = vpop.f32.mrf.mxu0  ;;  %v1348_v35 = vpop.f32.mrf.mxu1 }
  0xab   :  { %488 = vst.msk [vmem:[%s1963_s2 + $0x28] sm:$0xff] %vm482_vm1, %v305_v34  ;;  %v1416_v47 = vpop.f32.mrf.mxu2  ;;  %v687_v1 = vmul.f32 %v305_v34, %v305_v34  ;;  %v556_v4 = vsel %vm482_vm1, %v305_v34, 0.0 }
  0xac   :  { %504 = vst.msk [vmem:[%s1963_s2 + $0xa8] sm:$0xff] %vm482_vm1, %v1348_v35  ;;  %v557_v10 = vadd.f32 %v556_v4, %v1329_v30 }
  0xad   :  { %519 = vst.msk [vmem:[%s1963_s2 + $0x120] sm:$0xff] %vm482_vm1, %v1416_v47  ;;  %v755_v6 = vsel %vm482_vm1, %v687_v1, 0.0 }
  0xae   :  { %v756_v14 = vadd.f32 %v755_v6, %v1342_v32 }
  0xaf   :  { %v1518_v3 = vpop.f32.mrf.mxu3 }
  0xb0   :  { %535 = vst.msk [vmem:[%s1963_s2 + $0x1a0] sm:$0xff] %vm482_vm1, %v1518_v3 }
  0xb2   :  { %v308_v38 = vpop.f32.mrf.mxu0  ;;  %v1370_v39 = vpop.f32.mrf.mxu1 }
  0xb3   :  { %489 = vst.msk [vmem:[%s1963_s2 + $0x30] sm:$0xff] %vm482_vm1, %v308_v38  ;;  %v1441_v51 = vpop.f32.mrf.mxu2  ;;  %v688_v5 = vmul.f32 %v308_v38, %v308_v38  ;;  %v558_v7 = vsel %vm482_vm1, %v308_v38, 0.0 }
  0xb4   :  { %505 = vst.msk [vmem:[%s1963_s2 + $0xb0] sm:$0xff] %vm482_vm1, %v1370_v39  ;;  %v559_v15 = vadd.f32 %v558_v7, %v557_v10 }
  0xb5   :  { %520 = vst.msk [vmem:[%s1963_s2 + $0x128] sm:$0xff] %vm482_vm1, %v1441_v51  ;;  %v757_v11 = vsel %vm482_vm1, %v688_v5, 0.0 }
  0xb6   :  { %v758_v24 = vadd.f32 %v757_v11, %v756_v14 }
  0xb7   :  { %v1552_v23 = vpop.f32.mrf.mxu3 }
  0xb8   :  { %536 = vst.msk [vmem:[%s1963_s2 + $0x1a8] sm:$0xff] %vm482_vm1, %v1552_v23 }
  0xba   :  { %v311_v42 = vpop.f32.mrf.mxu0  ;;  %v1392_v43 = vpop.f32.mrf.mxu1 }
  0xbb   :  { %490 = vst.msk [vmem:[%s1963_s2 + $0x38] sm:$0xff] %vm482_vm1, %v311_v42  ;;  %v1466_v55 = vpop.f32.mrf.mxu2  ;;  %v689_v8 = vmul.f32 %v311_v42, %v311_v42  ;;  %v560_v12 = vsel %vm482_vm1, %v311_v42, 0.0 }
  0xbc   :  { %506 = vst.msk [vmem:[%s1963_s2 + $0xb8] sm:$0xff] %vm482_vm1, %v1392_v43  ;;  %v561_v25 = vadd.f32 %v560_v12, %v559_v15 }
  0xbd   :  { %521 = vst.msk [vmem:[%s1963_s2 + $0x130] sm:$0xff] %vm482_vm1, %v1466_v55  ;;  %v759_v19 = vsel %vm482_vm1, %v689_v8, 0.0 }
  0xbe   :  { %v760_v31 = vadd.f32 %v759_v19, %v758_v24 }
  0xbf   :  { %v1585_v11 = vpop.f32.mrf.mxu3 }
  0xc0   :  { %537 = vst.msk [vmem:[%s1963_s2 + $0x1b0] sm:$0xff] %vm482_vm1, %v1585_v11 }
  0xc2   :  { %v314_v45 = vpop.f32.mrf.mxu0  ;;  %v1410_v46 = vpop.f32.mrf.mxu1 }
  0xc3   :  { %491 = vst.msk [vmem:[%s1963_s2 + $0x40] sm:$0xff] %vm482_vm1, %v314_v45  ;;  %v1491_v60 = vpop.f32.mrf.mxu2  ;;  %v690_v13 = vmul.f32 %v314_v45, %v314_v45  ;;  %v562_v20 = vsel %vm482_vm1, %v314_v45, 0.0 }
  0xc4   :  { %507 = vst.msk [vmem:[%s1963_s2 + $0xc0] sm:$0xff] %vm482_vm1, %v1410_v46  ;;  %v563_v32 = vadd.f32 %v562_v20, %v561_v25 }
  0xc5   :  { %522 = vst.msk [vmem:[%s1963_s2 + $0x138] sm:$0xff] %vm482_vm1, %v1491_v60  ;;  %v761_v27 = vsel %vm482_vm1, %v690_v13, 0.0 }
  0xc6   :  { %v762_v38 = vadd.f32 %v761_v27, %v760_v31 }
  0xca   :  { %v317_v49 = vpop.f32.mrf.mxu0  ;;  %v1435_v50 = vpop.f32.mrf.mxu1 }
  0xcb   :  { %492 = vst.msk [vmem:[%s1963_s2 + $0x48] sm:$0xff] %vm482_vm1, %v317_v49  ;;  %v1516_v2 = vpop.f32.mrf.mxu2  ;;  %v691_v21 = vmul.f32 %v317_v49, %v317_v49  ;;  %v564_v28 = vsel %vm482_vm1, %v317_v49, 0.0 }
  0xcc   :  { %508 = vst.msk [vmem:[%s1963_s2 + $0xc8] sm:$0xff] %vm482_vm1, %v1435_v50  ;;  %v565_v41 = vadd.f32 %v564_v28, %v563_v32  ;;  %v698_v32 = vmul.f32 %v1240_v57, %v1240_v57 }
  0xcd   :  { %523 = vst.msk [vmem:[%s1963_s2 + $0x140] sm:$0xff] %vm482_vm1, %v1516_v2  ;;  %v763_v33 = vsel %vm482_vm1, %v691_v21, 0.0 }
  0xce   :  { %v764_v1 = vadd.f32 %v763_v33, %v762_v38  ;;  %v1618_v38 = vpop.f32.mrf.mxu3 }
  0xcf   :  { %538 = vst.msk [vmem:[%s1963_s2 + $0x1b8] sm:$0xff] %vm482_vm1, %v1618_v38 }
  0xd2   :  { %v320_v53 = vpop.f32.mrf.mxu0  ;;  %v1460_v54 = vpop.f32.mrf.mxu1 }
  0xd3   :  { %493 = vst.msk [vmem:[%s1963_s2 + $0x50] sm:$0xff] %vm482_vm1, %v320_v53  ;;  %v1550_v22 = vpop.f32.mrf.mxu2  ;;  %v692_v30 = vmul.f32 %v320_v53, %v320_v53  ;;  %v566_v34 = vsel %vm482_vm1, %v320_v53, 0.0 }
  0xd4   :  { %509 = vst.msk [vmem:[%s1963_s2 + $0xd0] sm:$0xff] %vm482_vm1, %v1460_v54  ;;  %v567_v4 = vadd.f32 %v566_v34, %v565_v41 }
  0xd5   :  { %524 = vst.msk [vmem:[%s1963_s2 + $0x148] sm:$0xff] %vm482_vm1, %v1550_v22  ;;  %v765_v42 = vsel %vm482_vm1, %v692_v30, 0.0 }
  0xda   :  { %v323_v58 = vpop.f32.mrf.mxu0  ;;  %v1485_v59 = vpop.f32.mrf.mxu1 }
  0xdb   :  { %494 = vst.msk [vmem:[%s1963_s2 + $0x58] sm:$0xff] %vm482_vm1, %v323_v58  ;;  %v693_v37 = vmul.f32 %v323_v58, %v323_v58  ;;  %v568_v45 = vsel %vm482_vm1, %v323_v58, 0.0  ;;  %v1583_v53 = vpop.f32.mrf.mxu2  ;;  %v766_v58 = vadd.f32 %v765_v42, %v764_v1 }
  0xdc   :  { %510 = vst.msk [vmem:[%s1963_s2 + $0xd8] sm:$0xff] %vm482_vm1, %v1485_v59  ;;  %v569_v12 = vadd.f32 %v568_v45, %v567_v4  ;;  %v578_v45 = vsel %vm482_vm1, %v1240_v57, 0.0  ;;  %v777_v57 = vsel %vm482_vm1, %v698_v32, 0.0 }
  0xdd   :  { %v767_v7 = vsel %vm482_vm1, %v693_v37, 0.0  ;;  %525 = vst.msk [vmem:[%s1963_s2 + $0x150] sm:$0xff] %vm482_vm1, %v1583_v53 }
  0xde   :  { %v768_v15 = vadd.f32 %v767_v7, %v766_v58  ;;  %v580_v7 = vsel %vm482_vm1, %v1259_v62, 0.0 }
  0xe2   :  { %v326_v63 = vpop.f32.mrf.mxu0  ;;  %v1510_v0 = vpop.f32.mrf.mxu1 }
  0xe3   :  { %495 = vst.msk [vmem:[%s1963_s2 + $0x60] sm:$0xff] %vm482_vm1, %v326_v63  ;;  %v694_v49 = vmul.f32 %v326_v63, %v326_v63  ;;  %v570_v8 = vsel %vm482_vm1, %v326_v63, 0.0  ;;  %v1616_v37 = vpop.f32.mrf.mxu2 }
  0xe4   :  { %511 = vst.msk [vmem:[%s1963_s2 + $0xe0] sm:$0xff] %vm482_vm1, %v1510_v0  ;;  %v571_v19 = vadd.f32 %v570_v8, %v569_v12  ;;  %v700_v8 = vmul.f32 %v1282_v9, %v1282_v9 }
  0xe5   :  { %v769_v63 = vsel %vm482_vm1, %v694_v49, 0.0  ;;  %v699_v49 = vmul.f32 %v1259_v62, %v1259_v62  ;;  %526 = vst.msk [vmem:[%s1963_s2 + $0x158] sm:$0xff] %vm482_vm1, %v1616_v37  ;;  %v584_v62 = vsel %vm482_vm1, %v1303_v18, 0.0 }
  0xe7   :  { %v779_v12 = vsel %vm482_vm1, %v699_v49, 0.0  ;;  %v705_v49 = vmul.f32 %v1392_v43, %v1392_v43 }
  0xea   :  { %v329_v16 = vpop.f32.mrf.mxu0  ;;  %v1542_v17 = vpop.f32.mrf.mxu1 }
  0xeb   :  { %496 = vst.msk [vmem:[%s1963_s2 + $0x68] sm:$0xff] %vm482_vm1, %v329_v16  ;;  %v695_v10 = vmul.f32 %v329_v16, %v329_v16  ;;  %v572_v13 = vsel %vm482_vm1, %v329_v16, 0.0  ;;  %v770_v16 = vadd.f32 %v769_v63, %v768_v15  ;;  %v582_v63 = vsel %vm482_vm1, %v1282_v9, 0.0 }
  0xec   :  { %512 = vst.msk [vmem:[%s1963_s2 + $0xe8] sm:$0xff] %vm482_vm1, %v1542_v17  ;;  %v573_v24 = vadd.f32 %v572_v13, %v571_v19  ;;  %v701_v13 = vmul.f32 %v1303_v18, %v1303_v18  ;;  %v781_v19 = vsel %vm482_vm1, %v700_v8, 0.0  ;;  %v586_v18 = vsel %vm482_vm1, %v1320_v26, 0.0 }
  0xed   :  { %v771_v20 = vsel %vm482_vm1, %v695_v10, 0.0 }
  0xee   :  { %v772_v27 = vadd.f32 %v771_v20, %v770_v16  ;;  %v702_v20 = vmul.f32 %v1320_v26, %v1320_v26  ;;  %v1657_v16 = vpop.f32.mrf.mxu3  ;;  %v783_v9 = vsel %vm482_vm1, %v701_v13, 0.0 }
  0xef   :  { %539 = vst.msk [vmem:[%s1963_s2 + $0x1c0] sm:$0xff] %vm482_vm1, %v1657_v16 }
  0xf0   :  { %v785_v32 = vsel %vm482_vm1, %v702_v20, 0.0 }
  0xf2   :  { %v332_v5 = vpop.f32.mrf.mxu0  ;;  %v1575_v6 = vpop.f32.mrf.mxu1 }
  0xf3   :  { %497 = vst.msk [vmem:[%s1963_s2 + $0x70] sm:$0xff] %vm482_vm1, %v332_v5  ;;  %v696_v14 = vmul.f32 %v332_v5, %v332_v5  ;;  %v574_v21 = vsel %vm482_vm1, %v332_v5, 0.0 }
  0xf4   :  { %513 = vst.msk [vmem:[%s1963_s2 + $0xf0] sm:$0xff] %vm482_vm1, %v1575_v6  ;;  %v575_v28 = vadd.f32 %v574_v21, %v573_v24  ;;  %v1655_v21 = vpop.f32.mrf.mxu2 }
  0xf5   :  { %v773_v25 = vsel %vm482_vm1, %v696_v14, 0.0  ;;  %527 = vst.msk [vmem:[%s1963_s2 + $0x160] sm:$0xff] %vm482_vm1, %v1655_v21 }
  0xf6   :  { %v774_v41 = vadd.f32 %v773_v25, %v772_v27  ;;  %v703_v27 = vmul.f32 %v1348_v35, %v1348_v35  ;;  %v1691_v8 = vpop.f32.mrf.mxu3 }
  0xf7   :  { %540 = vst.msk [vmem:[%s1963_s2 + $0x1c8] sm:$0xff] %vm482_vm1, %v1691_v8 }
  0xfa   :  { %v335_v30 = vpop.f32.mrf.mxu0  ;;  %v1607_v31 = vpop.f32.mrf.mxu1 }
  0xfb   :  { %498 = vst.msk [vmem:[%s1963_s2 + $0x78] sm:$0xff] %vm482_vm1, %v335_v30  ;;  %v576_v33 = vsel %vm482_vm1, %v335_v30, 0.0  ;;  %v697_v34 = vmul.f32 %v335_v30, %v335_v30 }
  0xfc   :  { %v577_v42 = vadd.f32 %v576_v33, %v575_v28  ;;  %514 = vst.msk [vmem:[%s1963_s2 + $0xf8] sm:$0xff] %vm482_vm1, %v1607_v31  ;;  %v588_v33 = vsel %vm482_vm1, %v1348_v35, 0.0  ;;  %v592_v35 = vsel %vm482_vm1, %v1392_v43, 0.0  ;;  %v594_v43 = vsel %vm482_vm1, %v1410_v46, 0.0 }
  0xfd   :  { %v775_v1 = vsel %vm482_vm1, %v697_v34, 0.0  ;;  %v704_v34 = vmul.f32 %v1370_v39, %v1370_v39 }
  0xfe   :  { %v579_v4 = vadd.f32 %v578_v45, %v577_v42  ;;  %v776_v5 = vadd.f32 %v775_v1, %v774_v41  ;;  %v787_v42 = vsel %vm482_vm1, %v703_v27, 0.0  ;;  %v590_v45 = vsel %vm482_vm1, %v1370_v39, 0.0 }
  0xff   :  { %v791_v39 = vsel %vm482_vm1, %v705_v49, 0.0  ;;  %v604_v49 = vsel %vm482_vm1, %v1542_v17, 0.0 }
 0x100   :  { %v581_v10 = vadd.f32 %v580_v7, %v579_v4  ;;  %v778_v58 = vadd.f32 %v777_v57, %v776_v5  ;;  %v789_v5 = vsel %vm482_vm1, %v704_v34, 0.0  ;;  %v706_v57 = vmul.f32 %v1410_v46, %v1410_v46  ;;  %v1689_v7 = vpop.f32.mrf.mxu2 }
 0x101   :  { %528 = vst.msk [vmem:[%s1963_s2 + $0x168] sm:$0xff] %vm482_vm1, %v1689_v7 }
 0x102   :  { %v583_v14 = vadd.f32 %v582_v63, %v581_v10  ;;  %v780_v15 = vadd.f32 %v779_v12, %v778_v58  ;;  %v707_v12 = vmul.f32 %v1435_v50, %v1435_v50 }
 0x104   :  { %v585_v24 = vadd.f32 %v584_v62, %v583_v14  ;;  %v782_v25 = vadd.f32 %v781_v19, %v780_v15  ;;  %v793_v14 = vsel %vm482_vm1, %v706_v57, 0.0  ;;  %v596_v15 = vsel %vm482_vm1, %v1435_v50, 0.0 }
 0x105   :  { %v708_v19 = vmul.f32 %v1460_v54, %v1460_v54  ;;  %v795_v20 = vsel %vm482_vm1, %v707_v12, 0.0  ;;  %v600_v50 = vsel %vm482_vm1, %v1485_v59, 0.0  ;;  %v606_v57 = vsel %vm482_vm1, %v1575_v6, 0.0 }
 0x106   :  { %v587_v28 = vadd.f32 %v586_v18, %v585_v24  ;;  %v784_v30 = vadd.f32 %v783_v9, %v782_v25  ;;  %v598_v24 = vsel %vm482_vm1, %v1460_v54, 0.0  ;;  %v709_v25 = vmul.f32 %v1485_v59, %v1485_v59 }
 0x107   :  { %v797_v27 = vsel %vm482_vm1, %v708_v19, 0.0  ;;  %v602_v59 = vsel %vm482_vm1, %v1510_v0, 0.0 }
 0x108   :  { %v589_v26 = vadd.f32 %v588_v33, %v587_v28  ;;  %v786_v41 = vadd.f32 %v785_v32, %v784_v30  ;;  %v710_v28 = vmul.f32 %v1510_v0, %v1510_v0  ;;  %v1723_v30 = vpop.f32.mrf.mxu2  ;;  %v1725_v32 = vpop.f32.mrf.mxu3  ;;  %v799_v54 = vsel %vm482_vm1, %v709_v25, 0.0 }
 0x109   :  { %529 = vst.msk [vmem:[%s1963_s2 + $0x170] sm:$0xff] %vm482_vm1, %v1723_v30  ;;  %v713_v0 = vmul.f32 %v1607_v31, %v1607_v31 }
 0x10a   :  { %v788_v1 = vadd.f32 %v787_v42, %v786_v41  ;;  %v591_v4 = vadd.f32 %v590_v45, %v589_v26  ;;  %v711_v26 = vmul.f32 %v1542_v17, %v1542_v17  ;;  %541 = vst.msk [vmem:[%s1963_s2 + $0x1d0] sm:$0xff] %vm482_vm1, %v1725_v32  ;;  %v801_v45 = vsel %vm482_vm1, %v710_v28, 0.0 }
 0x10b   :  { %v714_v17 = vmul.f32 %v1327_v29, %v1327_v29  ;;  %v807_v12 = vsel %vm482_vm1, %v713_v0, 0.0  ;;  %v720_v0 = vmul.f32 %v1466_v55, %v1466_v55 }
 0x10c   :  { %v593_v10 = vadd.f32 %v592_v35, %v591_v4  ;;  %v790_v58 = vadd.f32 %v789_v5, %v788_v1  ;;  %v712_v1 = vmul.f32 %v1575_v6, %v1575_v6  ;;  %v803_v35 = vsel %vm482_vm1, %v711_v26, 0.0 }
 0x10d   :  { %v610_v6 = vsel %vm482_vm1, %v1327_v29, 0.0 }
 0x10e   :  { %v595_v63 = vadd.f32 %v594_v43, %v593_v10  ;;  %v792_v13 = vadd.f32 %v791_v39, %v790_v58  ;;  %v608_v10 = vsel %vm482_vm1, %v1607_v31, 0.0  ;;  %v805_v43 = vsel %vm482_vm1, %v712_v1, 0.0 }
 0x10f   :  { %v715_v31 = vmul.f32 %v1354_v36, %v1354_v36  ;;  %v620_v1 = vsel %vm482_vm1, %v1441_v51, 0.0 }
 0x110   :  { %v597_v46 = vadd.f32 %v596_v15, %v595_v63  ;;  %v794_v62 = vadd.f32 %v793_v14, %v792_v13  ;;  %v1758_v63 = vpop.f32.mrf.mxu2  ;;  %v1760_v13 = vpop.f32.mrf.mxu3 }
 0x111   :  { %530 = vst.msk [vmem:[%s1963_s2 + $0x178] sm:$0xff] %vm482_vm1, %v1758_v63 }
 0x112   :  { %v599_v9 = vadd.f32 %v598_v24, %v597_v46  ;;  %v796_v18 = vadd.f32 %v795_v20, %v794_v62  ;;  %542 = vst.msk [vmem:[%s1963_s2 + $0x1d8] sm:$0xff] %vm482_vm1, %v1760_v13  ;;  %v809_v62 = vsel %vm482_vm1, %v714_v17, 0.0  ;;  %v612_v20 = vsel %vm482_vm1, %v1354_v36, 0.0 }
 0x113   :  { %v716_v24 = vmul.f32 %v1376_v40, %v1376_v40  ;;  %v616_v36 = vsel %vm482_vm1, %v1398_v44, 0.0  ;;  %v722_v17 = vmul.f32 %v1516_v2, %v1516_v2 }
 0x114   :  { %v601_v33 = vadd.f32 %v600_v50, %v599_v9  ;;  %v798_v34 = vadd.f32 %v797_v27, %v796_v18  ;;  %v811_v9 = vsel %vm482_vm1, %v715_v31, 0.0  ;;  %v614_v18 = vsel %vm482_vm1, %v1376_v40, 0.0 }
 0x115   :  { %v717_v27 = vmul.f32 %v1398_v44, %v1398_v44  ;;  %v719_v44 = vmul.f32 %v1441_v51, %v1441_v51  ;;  %v624_v51 = vsel %vm482_vm1, %v1491_v60, 0.0 }
 0x116   :  { %v800_v41 = vadd.f32 %v799_v54, %v798_v34  ;;  %v603_v42 = vadd.f32 %v602_v59, %v601_v33  ;;  %v813_v33 = vsel %vm482_vm1, %v716_v24, 0.0  ;;  %v718_v34 = vmul.f32 %v1416_v47, %v1416_v47 }
 0x117   :  { %v815_v40 = vsel %vm482_vm1, %v717_v27, 0.0 }
 0x118   :  { %v802_v4 = vadd.f32 %v801_v45, %v800_v41  ;;  %v605_v5 = vadd.f32 %v604_v49, %v603_v42  ;;  %v1791_v54 = vpop.f32.mrf.mxu3  ;;  %v618_v41 = vsel %vm482_vm1, %v1416_v47, 0.0  ;;  %v817_v49 = vsel %vm482_vm1, %v718_v34, 0.0 }
 0x119   :  { %543 = vst.msk [vmem:[%s1963_s2 + $0x1e0] sm:$0xff] %vm482_vm1, %v1791_v54  ;;  %v622_v47 = vsel %vm482_vm1, %v1466_v55, 0.0  ;;  %v634_v34 = vsel %vm482_vm1, %v1655_v21, 0.0 }
 0x11a   :  { %v804_v58 = vadd.f32 %v803_v35, %v802_v4  ;;  %v607_v39 = vadd.f32 %v606_v57, %v605_v5  ;;  %v819_v35 = vsel %vm482_vm1, %v719_v44, 0.0  ;;  %v721_v57 = vmul.f32 %v1491_v60, %v1491_v60 }
 0x11b   :  { %v723_v60 = vmul.f32 %v1550_v22, %v1550_v22  ;;  %v728_v44 = vmul.f32 %v1723_v30, %v1723_v30 }
 0x11c   :  { %v806_v14 = vadd.f32 %v805_v43, %v804_v58  ;;  %v609_v15 = vadd.f32 %v608_v10, %v607_v39  ;;  %v821_v39 = vsel %vm482_vm1, %v720_v0, 0.0  ;;  %v823_v55 = vsel %vm482_vm1, %v721_v57, 0.0 }
 0x11d   :  { %v640_v0 = vsel %vm482_vm1, %v1758_v63, 0.0 }
 0x11e   :  { %v611_v19 = vadd.f32 %v610_v6, %v609_v15  ;;  %v808_v46 = vadd.f32 %v807_v12, %v806_v14  ;;  %v626_v15 = vsel %vm482_vm1, %v1516_v2, 0.0  ;;  %v630_v2 = vsel %vm482_vm1, %v1583_v53, 0.0 }
 0x120   :  { %v613_v29 = vadd.f32 %v612_v20, %v611_v19  ;;  %v810_v25 = vadd.f32 %v809_v62, %v808_v46  ;;  %v1818_v43 = vpop.f32.mrf.mxu3  ;;  %v825_v19 = vsel %vm482_vm1, %v722_v17, 0.0  ;;  %v628_v46 = vsel %vm482_vm1, %v1550_v22, 0.0 }
 0x121   :  { %544 = vst.msk [vmem:[%s1963_s2 + $0x1e8] sm:$0xff] %vm482_vm1, %v1818_v43  ;;  %v724_v62 = vmul.f32 %v1583_v53, %v1583_v53  ;;  %v632_v22 = vsel %vm482_vm1, %v1616_v37, 0.0 }
 0x122   :  { %v615_v50 = vadd.f32 %v614_v18, %v613_v29  ;;  %v812_v28 = vadd.f32 %v811_v9, %v810_v25  ;;  %v827_v29 = vsel %vm482_vm1, %v723_v60, 0.0  ;;  %v725_v25 = vmul.f32 %v1616_v37, %v1616_v37 }
 0x123   :  { %v829_v27 = vsel %vm482_vm1, %v724_v62, 0.0  ;;  %v727_v37 = vmul.f32 %v1689_v7, %v1689_v7  ;;  %v734_v62 = vmul.f32 %v1518_v3, %v1518_v3 }
 0x124   :  { %v617_v59 = vadd.f32 %v616_v36, %v615_v50  ;;  %v814_v26 = vadd.f32 %v813_v33, %v812_v28  ;;  %v726_v50 = vmul.f32 %v1655_v21, %v1655_v21  ;;  %v831_v53 = vsel %vm482_vm1, %v725_v25, 0.0 }
 0x125   :  { %v835_v21 = vsel %vm482_vm1, %v727_v37, 0.0 }
 0x126   :  { %v619_v42 = vadd.f32 %v618_v41, %v617_v59  ;;  %v816_v45 = vadd.f32 %v815_v40, %v814_v26  ;;  %v833_v40 = vsel %vm482_vm1, %v726_v50, 0.0  ;;  %v636_v41 = vsel %vm482_vm1, %v1689_v7, 0.0 }
 0x127   :  { %v730_v7 = vmul.f32 %v1418_v48, %v1418_v48 }
 0x128   :  { %v621_v4 = vadd.f32 %v620_v1, %v619_v42  ;;  %v818_v5 = vadd.f32 %v817_v49, %v816_v45  ;;  %v1845_v28 = vpop.f32.mrf.mxu3  ;;  %v729_v42 = vmul.f32 %v1758_v63, %v1758_v63  ;;  %v638_v1 = vsel %vm482_vm1, %v1723_v30, 0.0 }
 0x129   :  { %545 = vst.msk [vmem:[%s1963_s2 + $0x1f0] sm:$0xff] %vm482_vm1, %v1845_v28  ;;  %v642_v30 = vsel %vm482_vm1, %v1418_v48, 0.0  ;;  %v731_v63 = vmul.f32 %v1443_v52, %v1443_v52  ;;  %v841_v17 = vsel %vm482_vm1, %v730_v7, 0.0  ;;  %v646_v48 = vsel %vm482_vm1, %v1468_v56, 0.0 }
 0x12a   :  { %v820_v10 = vadd.f32 %v819_v35, %v818_v5  ;;  %v623_v58 = vadd.f32 %v622_v47, %v621_v4  ;;  %v837_v35 = vsel %vm482_vm1, %v728_v44, 0.0  ;;  %v839_v47 = vsel %vm482_vm1, %v729_v42, 0.0 }
 0x12b   :  { %v843_v60 = vsel %vm482_vm1, %v731_v63, 0.0  ;;  %v739_v44 = vmul.f32 %v1691_v8, %v1691_v8 }
 0x12c   :  { %v625_v12 = vadd.f32 %v624_v51, %v623_v58  ;;  %v822_v14 = vadd.f32 %v821_v39, %v820_v10 }
 0x12e   :  { %v627_v6 = vadd.f32 %v626_v15, %v625_v12  ;;  %v824_v31 = vadd.f32 %v823_v55, %v822_v14  ;;  %v644_v12 = vsel %vm482_vm1, %v1443_v52, 0.0  ;;  %v732_v14 = vmul.f32 %v1468_v56, %v1468_v56 }
 0x12f   :  { %v648_v52 = vsel %vm482_vm1, %v1493_v61, 0.0  ;;  %v650_v56 = vsel %vm482_vm1, %v1518_v3, 0.0  ;;  %v654_v3 = vsel %vm482_vm1, %v1585_v11, 0.0 }
 0x130   :  { %v629_v20 = vadd.f32 %v628_v46, %v627_v6  ;;  %v826_v24 = vadd.f32 %v825_v19, %v824_v31  ;;  %v1873_v57 = vpop.f32.mrf.mxu3  ;;  %v733_v6 = vmul.f32 %v1493_v61, %v1493_v61  ;;  %v845_v46 = vsel %vm482_vm1, %v732_v14, 0.0 }
 0x131   :  { %546 = vst.msk [vmem:[%s1963_s2 + $0x1f8] sm:$0xff] %vm482_vm1, %v1873_v57  ;;  %v652_v61 = vsel %vm482_vm1, %v1552_v23, 0.0  ;;  %v744_v14 = vmul.f32 %v1845_v28, %v1845_v28  ;;  %s997_s2 = smov [#allocation2]  }
 0x132   :  { %v631_v9 = vadd.f32 %v630_v2, %v629_v20  ;;  %v828_v18 = vadd.f32 %v827_v29, %v826_v24  ;;  %v847_v29 = vsel %vm482_vm1, %v733_v6, 0.0  ;;  %v735_v2 = vmul.f32 %v1552_v23, %v1552_v23  ;;  %s887_s16 = sshll.u32 %s997_s2, 4  ;;  %s888_s16 = int_to_ptr.vmem [resolvable:$true] %s887_s16 }
 0x133   :  { %v656_v23 = vsel %vm482_vm1, %v1618_v38, 0.0  ;;  %v672_v6 = vsel %vm482_vm1, %v1873_v57, 0.0 }
 0x134   :  { %v633_v33 = vadd.f32 %v632_v22, %v631_v9  ;;  %v830_v36 = vadd.f32 %v829_v27, %v828_v18  ;;  %v849_v18 = vsel %vm482_vm1, %v734_v62, 0.0  ;;  %v736_v27 = vmul.f32 %v1585_v11, %v1585_v11 }
 0x135   :  { %v658_v11 = vsel %vm482_vm1, %v1657_v16, 0.0 }
 0x136   :  { %v832_v59 = vadd.f32 %v831_v53, %v830_v36  ;;  %v635_v26 = vadd.f32 %v634_v34, %v633_v33  ;;  %v851_v33 = vsel %vm482_vm1, %v735_v2, 0.0  ;;  %v737_v36 = vmul.f32 %v1618_v38, %v1618_v38 }
 0x137   :  { %v853_v37 = vsel %vm482_vm1, %v736_v27, 0.0  ;;  %v660_v38 = vsel %vm482_vm1, %v1691_v8, 0.0  ;;  %v664_v8 = vsel %vm482_vm1, %v1760_v13, 0.0 }
 0x138   :  { %v834_v45 = vadd.f32 %v833_v40, %v832_v59  ;;  %v637_v49 = vadd.f32 %v636_v41, %v635_v26  ;;  %v738_v59 = vmul.f32 %v1657_v16, %v1657_v16  ;;  %v855_v41 = vsel %vm482_vm1, %v737_v36, 0.0 }
 0x139   :  { %v662_v16 = vsel %vm482_vm1, %v1725_v32, 0.0 }
 0x13a   :  { %v836_v4 = vadd.f32 %v835_v21, %v834_v45  ;;  %v639_v5 = vadd.f32 %v638_v1, %v637_v49  ;;  %v857_v49 = vsel %vm482_vm1, %v738_v59, 0.0  ;;  %v740_v21 = vmul.f32 %v1725_v32, %v1725_v32 }
 0x13b   :  { %v666_v32 = vsel %vm482_vm1, %v1791_v54, 0.0 }
 0x13c   :  { %v838_v10 = vadd.f32 %v837_v35, %v836_v4  ;;  %v641_v58 = vadd.f32 %v640_v0, %v639_v5  ;;  %v859_v4 = vsel %vm482_vm1, %v739_v44, 0.0  ;;  %v741_v5 = vmul.f32 %v1760_v13, %v1760_v13 }
 0x13d   :  { %v668_v13 = vsel %vm482_vm1, %v1818_v43, 0.0 }
 0x13e   :  { %v643_v39 = vadd.f32 %v642_v30, %v641_v58  ;;  %v840_v51 = vadd.f32 %v839_v47, %v838_v10  ;;  %v861_v47 = vsel %vm482_vm1, %v740_v21, 0.0  ;;  %v742_v10 = vmul.f32 %v1791_v54, %v1791_v54 }
 0x13f   :  { %v863_v63 = vsel %vm482_vm1, %v741_v5, 0.0 }
 0x140   :  { %v645_v55 = vadd.f32 %v644_v12, %v643_v39  ;;  %v842_v15 = vadd.f32 %v841_v17, %v840_v51  ;;  %v743_v39 = vmul.f32 %v1818_v43, %v1818_v43  ;;  %v865_v12 = vsel %vm482_vm1, %v742_v10, 0.0 }
 0x141   :  { %v869_v43 = vsel %vm482_vm1, %v744_v14, 0.0 }
 0x142   :  { %v647_v31 = vadd.f32 %v646_v48, %v645_v55  ;;  %v844_v19 = vadd.f32 %v843_v60, %v842_v15  ;;  %v745_v55 = vmul.f32 %v1873_v57, %v1873_v57  ;;  %v867_v54 = vsel %vm482_vm1, %v743_v39, 0.0 }
 0x143   :  { %v670_v48 = vsel %vm482_vm1, %v1845_v28, 0.0 }
 0x144   :  { %v649_v20 = vadd.f32 %v648_v52, %v647_v31  ;;  %v846_v24 = vadd.f32 %v845_v46, %v844_v19  ;;  %v871_v46 = vsel %vm482_vm1, %v745_v55, 0.0 }
 0x146   :  { %v651_v25 = vadd.f32 %v650_v56, %v649_v20  ;;  %v848_v9 = vadd.f32 %v847_v29, %v846_v24 }
 0x148   :  { %v653_v22 = vadd.f32 %v652_v61, %v651_v25  ;;  %v850_v50 = vadd.f32 %v849_v18, %v848_v9 }
 0x14a   :  { %v852_v53 = vadd.f32 %v851_v33, %v850_v50  ;;  %v655_v34 = vadd.f32 %v654_v3, %v653_v22 }
 0x14c   :  { %v657_v26 = vadd.f32 %v656_v23, %v655_v34  ;;  %v854_v40 = vadd.f32 %v853_v37, %v852_v53 }
 0x14e   :  { %v659_v42 = vadd.f32 %v658_v11, %v657_v26  ;;  %v856_v45 = vadd.f32 %v855_v41, %v854_v40 }
 0x150   :  { %v661_v1 = vadd.f32 %v660_v38, %v659_v42  ;;  %v858_v0 = vadd.f32 %v857_v49, %v856_v45 }
 0x152   :  { %v663_v7 = vadd.f32 %v662_v16, %v661_v1  ;;  %v860_v35 = vadd.f32 %v859_v4, %v858_v0 }
 0x154   :  { %v665_v58 = vadd.f32 %v664_v8, %v663_v7  ;;  %v862_v30 = vadd.f32 %v861_v47, %v860_v35 }
 0x156   :  { %v864_v51 = vadd.f32 %v863_v63, %v862_v30  ;;  %v667_v17 = vadd.f32 %v666_v32, %v665_v58 }
 0x158   :  { %v866_v15 = vadd.f32 %v865_v12, %v864_v51  ;;  %v669_v60 = vadd.f32 %v668_v13, %v667_v17 }
 0x15a   :  { %v868_v31 = vadd.f32 %v867_v54, %v866_v15  ;;  %v671_v19 = vadd.f32 %v670_v48, %v669_v60 }
 0x15c   :  { %v870_v52 = vadd.f32 %v869_v43, %v868_v31  ;;  %v673_v62 = vadd.f32 %v672_v6, %v671_v19 }
 0x15e   :  { %v674_v20 = vrot.slane %v673_v62, 4  ;;  %v872_v24 = vadd.f32 %v871_v46, %v870_v52 }
 0x160   :  { %v675_v29 = vadd.f32 %v674_v20, %v673_v62  ;;  %v873_v56 = vrot.slane %v872_v24, 4 }
 0x162   :  { %v676_v2 = vrot.slane %v675_v29, 2  ;;  %v874_v25 = vadd.f32 %v873_v56, %v872_v24 }
 0x164   :  { %v677_v9 = vadd.f32 %v676_v2, %v675_v29  ;;  %v875_v18 = vrot.slane %v874_v25, 2 }
 0x166   :  { %v678_v28 = vrot.slane %v677_v9, 1  ;;  %v876_v61 = vadd.f32 %v875_v18, %v874_v25 }
 0x168   :  { %v679_v57 = vadd.f32 %v678_v28, %v677_v9  ;;  %v877_v27 = vrot.slane %v876_v61, 1 }
 0x16a   :  { %681 = vst.msk [vmem:[#allocation2] sm:$0x1] %vm680_vm2, %v679_v57  ;;  %v878_v22 = vadd.f32 %v877_v27, %v876_v61 }
 0x16c   :  { %879 = vst.msk [vmem:[#allocation2 + $0x1] sm:$0x1] %vm680_vm2, %v878_v22 }
 0x16d   :  { %892 = dma.vmem_to_hbm [thread:$0]  %s888_s16, 32, %s890_s19, [#allocation3]  }
 0x16e   :  { %995 = dma.done.wait [#allocation3], 32  }
 0x16f   :  { %996 = vsyncadd [#allocation3], 4294967264 }
 0x170   :  { %899 = vsyncpa [#allocation3], 1 }

</bundles_post_ra>
